<compile_context>
chip_gen: v7x
topology: tpu7x:2x2x1
jax: 0.10.0
libtpu: 0.0.40
codegen_flags: <defaults>
</compile_context>

<pallas_src>
import jax
import jax.numpy as jnp
from jax.experimental import pallas as pl
from jax.experimental.pallas import tpu as pltpu


def perceptron_kernel(params_ref, x_ref, o_ref):
    """Fused 2->4->1 perceptron, both sigmoids folded into tanh form.

    params_ref: SMEM (17,) f32, pre-folded on the host:
        [0:8]   A1 = 0.5*W1, row-major (4,2): A1[j,i] at index 2*j+i
        [8:12]  c1 = 0.5*b1
        [12:16] A2 = 0.25*W2[0,:]
        [16]    c2 = 0.5*b2 + 0.25*sum_j W2[0,j]
      so  t_j = tanh(A1[j,0]*x0 + A1[j,1]*x1 + c1[j])      (h_j = 0.5*t_j+0.5)
          out = 0.5*tanh(sum_j A2[j]*t_j + c2) + 0.5
      which equals sigmoid(W2 @ sigmoid(W1 @ x + b1) + b2) exactly.
    x_ref: VMEM (2, TS, 128) -- feature-major, batch on (sublane, lane)
    o_ref: VMEM (TS, 128)
    """
    x0 = x_ref[0]  # (TS, 128), sublane+lane dense
    x1 = x_ref[1]  # (TS, 128)

    # Output pre-activation accumulator, initialized with folded bias c2.
    acc = params_ref[16] + jnp.zeros_like(x0)

    # Fully unrolled hidden layer: 8 VPU MACs + 4 EUP tanh + 4 VPU MACs.
    for j in range(4):
        t = jnp.tanh(x0 * params_ref[2 * j]
                     + x1 * params_ref[2 * j + 1]
                     + params_ref[8 + j])
        acc = acc + t * params_ref[12 + j]

    # Final sigmoid: one tanh + one fused scale/shift.
    o_ref[...] = (0.5 * jnp.tanh(acc) + 0.5).astype(o_ref.dtype)


def perceptron_forward(x, W1, b1, W2, b2, *, tile_rows=2048):
    """Forward pass matching the PyTorch module.

    x:  (B, 2) f32
    W1: (4, 2), b1: (4,)   -- nn.Linear(2, 4) layout
    W2: (1, 4), b2: (1,)   -- nn.Linear(4, 1) layout
    Returns (B, 1) f32.
    """
    B = x.shape[0]
    R = pl.cdiv(B, 128)              # number of 128-lane batch rows
    R8 = ((R + 7) // 8) * 8          # sublane-aligned row count
    Bp = R8 * 128

    # Fold the sigmoid affine constants into the parameters (see kernel doc).
    W1 = W1.astype(jnp.float32)
    b1 = b1.astype(jnp.float32)
    W2 = W2.astype(jnp.float32)
    b2 = b2.astype(jnp.float32)
    A1 = (0.5 * W1).reshape(-1)                                   # (8,)
    c1 = 0.5 * b1                                                 # (4,)
    A2 = (0.25 * W2).reshape(-1)                                  # (4,)
    c2 = (0.5 * b2.reshape(-1) + 0.25 * jnp.sum(W2)).reshape(1)   # (1,)
    params = jnp.concatenate([A1, c1, A2, c2])                    # (17,) f32

    # Feature-major, (sublane, lane)-dense input: (2, R8, 128).
    # Single fused transpose+pad+reshape; a feature-major producer would
    # eliminate this copy entirely.
    xT = jnp.transpose(x).astype(jnp.float32)                     # (2, B)
    if Bp != B:
        xT = jnp.pad(xT, ((0, 0), (0, Bp - B)))
    x3 = xT.reshape(2, R8, 128)

    # Tile selection: multiple of 8 sublanes, large enough to amortize the
    # per-grid-step overhead, small enough that the double-buffered working
    # set (2*(2+1)*TS*128*4 B) fits VMEM on v5e/v6e/v7x, and >= 2 grid steps
    # when possible so v7x megacore can split the batch.
    TS = max(8, min(int(tile_rows), 8192, R8))
    TS = (TS // 8) * 8
    if R8 >= 16:
        half = ((((R8 + 1) // 2) + 7) // 8) * 8
        TS = min(TS, half)
    grid = (pl.cdiv(R8, TS),)

    out = pl.pallas_call(
        perceptron_kernel,
        out_shape=jax.ShapeDtypeStruct((R8, 128), jnp.float32),
        grid=grid,
        in_specs=[
            # Whole 17-float parameter slab resident in SMEM (scalar reads).
            pl.BlockSpec(memory_space=pltpu.MemorySpace.SMEM),
            # Batch-tiled, fully dense activations (auto double-buffered).
            pl.BlockSpec((2, TS, 128), lambda i: (0, i, 0)),
        ],
        out_specs=pl.BlockSpec((TS, 128), lambda i: (i, 0)),
        compiler_params=pltpu.CompilerParams(
            dimension_semantics=("parallel",),
            # Above v5e's 16 MiB default scoped limit, below v7x's 64 MiB
            # physical VMEM; covers the largest allowed tile (TS=8192).
            vmem_limit_bytes=48 * 1024 * 1024,
        ),
    )(params, x3)

    # Back to the PyTorch output layout (B, 1); padded/ragged rows discarded.
    return out.reshape(-1)[:B].reshape(B, 1)


def reference_forward(x, W1, b1, W2, b2):
    h = jax.nn.sigmoid(x @ W1.T + b1)
    return jax.nn.sigmoid(h @ W2.T + b2)


if __name__ == "__main__":
    key = jax.random.PRNGKey(0)
    k_x, k_w1, k_b1, k_w2, k_b2 = jax.random.split(key, 5)

    # Parameters in the exact nn.Linear layouts of the PyTorch module.
    W1 = jax.random.normal(k_w1, (4, 2), dtype=jnp.float32) * 0.5
    b1 = jax.random.normal(k_b1, (4,), dtype=jnp.float32) * 0.1
    W2 = jax.random.normal(k_w2, (1, 4), dtype=jnp.float32) * 0.5
    b2 = jax.random.normal(k_b2, (1,), dtype=jnp.float32) * 0.1

    # Small batch (matches the module's expected (B, 2) input).
    B = 8
    x = jax.random.normal(k_x, (B, 2), dtype=jnp.float32)
    out = jax.block_until_ready(perceptron_forward(x, W1, b1, W2, b2))
    ref = reference_forward(x, W1, b1, W2, b2)
    assert out.shape == (B, 1), out.shape
    assert jnp.allclose(out, ref, atol=2e-5, rtol=1e-5), (out, ref)

    # Larger, non-aligned batch: exercises the ragged last block (default
    # tile) and the multi-tile grid path (forced small tile).
    B2 = 3000
    x2 = jax.random.normal(k_x, (B2, 2), dtype=jnp.float32)
    ref2 = reference_forward(x2, W1, b1, W2, b2)

    out2a = jax.block_until_ready(perceptron_forward(x2, W1, b1, W2, b2))
    assert out2a.shape == (B2, 1), out2a.shape
    assert jnp.allclose(out2a, ref2, atol=2e-5, rtol=1e-5)

    out2b = jax.block_until_ready(
        perceptron_forward(x2, W1, b1, W2, b2, tile_rows=8))
    assert out2b.shape == (B2, 1), out2b.shape
    assert jnp.allclose(out2b, ref2, atol=2e-5, rtol=1e-5)

    print("KERNEL_OK")
</pallas_src>

<mosaic_0001>
module attributes {stable_mosaic.version = 11 : i64} {
  func.func @perceptron_kernel(%arg0: i32, %arg1: memref<17xf32, #tpu.memory_space<smem>>, %arg2: memref<2x8x128xf32, #tpu.memory_space<vmem>>, %arg3: memref<8x128xf32, #tpu.memory_space<vmem>>) attributes {dimension_semantics = [#tpu.dimension_semantics<parallel>], iteration_bounds = array<i64: 1>, scalar_prefetch = 0 : i64, scratch_operands = 0 : i64, tpu.core_type = #tpu.core_type<tc>, window_params = [{transform_indices = @transform_0, window_bounds = array<i64: 17>}, {transform_indices = @transform_1, window_bounds = array<i64: 2, 8, 128>}, {transform_indices = @transform_2, window_bounds = array<i64: 8, 128>}]} {
    %c0 = arith.constant 0 : index
    %c0_0 = arith.constant 0 : index
    %c0_1 = arith.constant 0 : index
    %0 = vector.load %arg2[%c0, %c0_0, %c0_1] : memref<2x8x128xf32, #tpu.memory_space<vmem>>, vector<1x8x128xf32>
    %1 = vector.shape_cast %0 : vector<1x8x128xf32> to vector<8x128xf32>
    %c1 = arith.constant 1 : index
    %c0_2 = arith.constant 0 : index
    %c0_3 = arith.constant 0 : index
    %2 = vector.load %arg2[%c1, %c0_2, %c0_3] : memref<2x8x128xf32, #tpu.memory_space<vmem>>, vector<1x8x128xf32>
    %3 = vector.shape_cast %2 : vector<1x8x128xf32> to vector<8x128xf32>
    %c16 = arith.constant 16 : index
    %4 = memref.load %arg1[%c16] : memref<17xf32, #tpu.memory_space<smem>>
    %cst = arith.constant 0.000000e+00 : f32
    %5 = vector.broadcast %cst : f32 to vector<8x128xf32>
    %6 = vector.broadcast %4 : f32 to vector<8x128xf32>
    %7 = arith.addf %6, %5 : vector<8x128xf32>
    %c0_4 = arith.constant 0 : index
    %8 = memref.load %arg1[%c0_4] : memref<17xf32, #tpu.memory_space<smem>>
    %9 = vector.broadcast %8 : f32 to vector<8x128xf32>
    %10 = arith.mulf %1, %9 : vector<8x128xf32>
    %c1_5 = arith.constant 1 : index
    %11 = memref.load %arg1[%c1_5] : memref<17xf32, #tpu.memory_space<smem>>
    %12 = vector.broadcast %11 : f32 to vector<8x128xf32>
    %13 = arith.mulf %3, %12 : vector<8x128xf32>
    %14 = arith.addf %10, %13 : vector<8x128xf32>
    %c8 = arith.constant 8 : index
    %15 = memref.load %arg1[%c8] : memref<17xf32, #tpu.memory_space<smem>>
    %16 = vector.broadcast %15 : f32 to vector<8x128xf32>
    %17 = arith.addf %14, %16 : vector<8x128xf32>
    %18 = math.tanh %17 : vector<8x128xf32>
    %c12 = arith.constant 12 : index
    %19 = memref.load %arg1[%c12] : memref<17xf32, #tpu.memory_space<smem>>
    %20 = vector.broadcast %19 : f32 to vector<8x128xf32>
    %21 = arith.mulf %18, %20 : vector<8x128xf32>
    %22 = arith.addf %7, %21 : vector<8x128xf32>
    %c2 = arith.constant 2 : index
    %23 = memref.load %arg1[%c2] : memref<17xf32, #tpu.memory_space<smem>>
    %24 = vector.broadcast %23 : f32 to vector<8x128xf32>
    %25 = arith.mulf %1, %24 : vector<8x128xf32>
    %c3 = arith.constant 3 : index
    %26 = memref.load %arg1[%c3] : memref<17xf32, #tpu.memory_space<smem>>
    %27 = vector.broadcast %26 : f32 to vector<8x128xf32>
    %28 = arith.mulf %3, %27 : vector<8x128xf32>
    %29 = arith.addf %25, %28 : vector<8x128xf32>
    %c9 = arith.constant 9 : index
    %30 = memref.load %arg1[%c9] : memref<17xf32, #tpu.memory_space<smem>>
    %31 = vector.broadcast %30 : f32 to vector<8x128xf32>
    %32 = arith.addf %29, %31 : vector<8x128xf32>
    %33 = math.tanh %32 : vector<8x128xf32>
    %c13 = arith.constant 13 : index
    %34 = memref.load %arg1[%c13] : memref<17xf32, #tpu.memory_space<smem>>
    %35 = vector.broadcast %34 : f32 to vector<8x128xf32>
    %36 = arith.mulf %33, %35 : vector<8x128xf32>
    %37 = arith.addf %22, %36 : vector<8x128xf32>
    %c4 = arith.constant 4 : index
    %38 = memref.load %arg1[%c4] : memref<17xf32, #tpu.memory_space<smem>>
    %39 = vector.broadcast %38 : f32 to vector<8x128xf32>
    %40 = arith.mulf %1, %39 : vector<8x128xf32>
    %c5 = arith.constant 5 : index
    %41 = memref.load %arg1[%c5] : memref<17xf32, #tpu.memory_space<smem>>
    %42 = vector.broadcast %41 : f32 to vector<8x128xf32>
    %43 = arith.mulf %3, %42 : vector<8x128xf32>
    %44 = arith.addf %40, %43 : vector<8x128xf32>
    %c10 = arith.constant 10 : index
    %45 = memref.load %arg1[%c10] : memref<17xf32, #tpu.memory_space<smem>>
    %46 = vector.broadcast %45 : f32 to vector<8x128xf32>
    %47 = arith.addf %44, %46 : vector<8x128xf32>
    %48 = math.tanh %47 : vector<8x128xf32>
    %c14 = arith.constant 14 : index
    %49 = memref.load %arg1[%c14] : memref<17xf32, #tpu.memory_space<smem>>
    %50 = vector.broadcast %49 : f32 to vector<8x128xf32>
    %51 = arith.mulf %48, %50 : vector<8x128xf32>
    %52 = arith.addf %37, %51 : vector<8x128xf32>
    %c6 = arith.constant 6 : index
    %53 = memref.load %arg1[%c6] : memref<17xf32, #tpu.memory_space<smem>>
    %54 = vector.broadcast %53 : f32 to vector<8x128xf32>
    %55 = arith.mulf %1, %54 : vector<8x128xf32>
    %c7 = arith.constant 7 : index
    %56 = memref.load %arg1[%c7] : memref<17xf32, #tpu.memory_space<smem>>
    %57 = vector.broadcast %56 : f32 to vector<8x128xf32>
    %58 = arith.mulf %3, %57 : vector<8x128xf32>
    %59 = arith.addf %55, %58 : vector<8x128xf32>
    %c11 = arith.constant 11 : index
    %60 = memref.load %arg1[%c11] : memref<17xf32, #tpu.memory_space<smem>>
    %61 = vector.broadcast %60 : f32 to vector<8x128xf32>
    %62 = arith.addf %59, %61 : vector<8x128xf32>
    %63 = math.tanh %62 : vector<8x128xf32>
    %c15 = arith.constant 15 : index
    %64 = memref.load %arg1[%c15] : memref<17xf32, #tpu.memory_space<smem>>
    %65 = vector.broadcast %64 : f32 to vector<8x128xf32>
    %66 = arith.mulf %63, %65 : vector<8x128xf32>
    %67 = arith.addf %52, %66 : vector<8x128xf32>
    %68 = math.tanh %67 : vector<8x128xf32>
    %cst_6 = arith.constant 5.000000e-01 : f32
    %69 = vector.broadcast %cst_6 : f32 to vector<8x128xf32>
    %70 = arith.mulf %69, %68 : vector<8x128xf32>
    %cst_7 = arith.constant 5.000000e-01 : f32
    %71 = vector.broadcast %cst_7 : f32 to vector<8x128xf32>
    %72 = arith.addf %70, %71 : vector<8x128xf32>
    %c0_8 = arith.constant 0 : index
    %c0_9 = arith.constant 0 : index
    %73 = vector.load %arg3[%c0_8, %c0_9] : memref<8x128xf32, #tpu.memory_space<vmem>>, vector<8x128xf32>
    tpu.vector_store %arg3[%c0_8, %c0_9], %72 {strides = array<i32>} : memref<8x128xf32, #tpu.memory_space<vmem>>, vector<8x128xf32>,
    return
  }
  func.func @transform_0(%arg0: i32) -> i32 {
    %c0_i32 = arith.constant 0 : i32
    %c0_i32_0 = arith.constant 0 : i32
    return %c0_i32 : i32
  }
  func.func @transform_1(%arg0: i32) -> (i32, i32, i32) {
    %c0_i32 = arith.constant 0 : i32
    %c0_i32_0 = arith.constant 0 : i32
    %c0_i32_1 = arith.constant 0 : i32
    return %c0_i32, %arg0, %c0_i32_0 : i32, i32, i32
  }
  func.func @transform_2(%arg0: i32) -> (i32, i32) {
    %c0_i32 = arith.constant 0 : i32
    %c0_i32_0 = arith.constant 0 : i32
    return %arg0, %c0_i32 : i32, i32
  }
}

</mosaic_0001>

<bundles_post_ra>
// kernel: tpu_custom_call.1
= control target key start
LH: loop header
LB: loop body
LE: loop exit
PB: predicated region body
PF: predicated region fallthrough
CT: control target
= control target key end

     0   :  { %7 = vsyncpa [#allocation5], 0  ;;  %s276_s0 = inlined_call_operand.hbm [shape: f32[17], index: 0, kind: input, shape index: {}]   ;;  %s277_s1 = inlined_call_operand.hbm [shape: f32[2,8,128], index: 1, kind: input, shape index: {}]   ;;  %s278_s2 = inlined_call_operand.hbm [shape: f32[8,128], index: 2, kind: output, shape index: {}]  }
   0x1   :  { %8 = vsyncpa [#allocation3], 0 }
   0x2   :  { %9 = vsyncpa [#allocation4], 0  ;;  %s154_s11 = scalar_lea.hbm %s276_s0, 16 }
   0x3   :  { %p155_p0 = scmp.ne.s32.totalorder %s276_s0, %s154_s11  ;;  %p158_p1 = scmp.lt.u32.totalorder %s154_s11, %s276_s0 }
   0x5   :  { %p160_p2 = pnand %p158_p1, %p155_p0 }
   0x7   :  { %163 = shalt.err (!%p160_p2)
}
   0x8   :  { %s214_s16 = smov [#allocation2]   ;;  %s215_s19 = smov [#allocation6]  }
   0x9   :  { %17 = dma.hbm_to_smem %s276_s0, 16, %s214_s16, [#allocation5]  }
   0xa   :  { %s23_s20 = sshll.u32 %s215_s19, 4  ;;  %s164_s23 = scalar_lea.hbm %s277_s1, 256  ;;  %s24_s20 = int_to_ptr.vmem [resolvable:$true] %s23_s20 }
   0xb   :  { %p165_p3 = scmp.ne.s32.totalorder %s277_s1, %s164_s23  ;;  %p168_p4 = scmp.lt.u32.totalorder %s164_s23, %s277_s1 }
   0xd   :  { %p170_p5 = pnand %p168_p4, %p165_p3 }
   0xf   :  { %173 = shalt.err (!%p170_p5)
}
  0x10   :  { %s174_s28 = scalar_lea.vmem %s24_s20, 256  ;;  %p179_p7 = scmp.lt.s32.totalorder %s24_s20, %s24_s20 }
  0x11   :  { %p175_p6 = scmp.ne.s32.totalorder %s24_s20, %s174_s28  ;;  %p180_p8 = scmp.lt.s32.totalorder %s174_s28, %s174_s28 }
  0x13   :  { %p181_p9 = por %p180_p8, %p179_p7 }
  0x15   :  { %p182_p10 = pnand %p181_p9, %p175_p6 }
  0x17   :  { %185 = shalt.err (!%p182_p10)
}
  0x18   :  { %s216_s0 = smov 128   ;;  %s217_s29 = smov 8  }
  0x19   :  { %29 = dma.hbm_to_vmem [thread:$0]  %s277_s1, 256, %s24_s20, [#allocation3], %s216_s0, %s216_s0, %s217_s29  }
  0x1a   :  { %208 = dma.done.wait [#allocation5], 16  }
  0x1b   :  { %209 = vsyncadd [#allocation5], 4294967280 }
  0x1c   :  { %210 = dma.done.wait [#allocation3], 256  }
  0x1d   :  { %211 = vsyncadd [#allocation3], 4294967040 }
  0x1e   :  { %36 = sfence }
  0x1f   :  { %s43_s4 = sld [smem:[#allocation2]]  ;;  %s124_s5 = sld [smem:[#allocation2 + $0x1]]  ;;  %v37_v0 = vld [vmem:[#allocation6] sm:$0xff]  ;;  %v39_v1 = vld [vmem:[#allocation6 + $0x8] sm:$0xff] }
  0x20   :  { %s125_s6 = sld [smem:[#allocation2 + $0x8]]  ;;  %s127_s7 = sld [smem:[#allocation2 + $0x2]] }
  0x21   :  { %s128_s8 = sld [smem:[#allocation2 + $0x3]]  ;;  %s258_s9 = sld [smem:[#allocation2 + $0x9]] }
  0x22   :  { %s131_s10 = sld [smem:[#allocation2 + $0x4]]  ;;  %s132_s11 = sld [smem:[#allocation2 + $0x5]] }
  0x23   :  { %s260_s12 = sld [smem:[#allocation2 + $0xa]]  ;;  %s135_s1 = sld [smem:[#allocation2 + $0x6]] }
  0x24   :  { %s136_s13 = sld [smem:[#allocation2 + $0x7]]  ;;  %s137_s14 = sld [smem:[#allocation2 + $0xb]] }
  0x25   :  { %v44_v2 = vstv %s43_s4  ;;  %v47_v4 = vstv %s124_s5  ;;  %s126_s15 = sld [smem:[#allocation2 + $0xc]]  ;;  %s123_s16 = sld [smem:[#allocation2 + $0x10]] }
  0x26   :  { %v45_v3 = vmul.f32 %v44_v2, %v37_v0  ;;  %v48_v5 = vmul.f32 %v47_v4, %v39_v1  ;;  %v59_v6 = vstv %s127_s7  ;;  %v51_v7 = vstv %s125_s6  ;;  %s130_s17 = sld [smem:[#allocation2 + $0xd]]  ;;  %s134_s18 = sld [smem:[#allocation2 + $0xe]] }
  0x27   :  { %v60_v8 = vmul.f32 %v59_v6, %v37_v0  ;;  %v62_v9 = vstv %s128_s8  ;;  %v66_v13 = vstv %s258_s9  ;;  %s138_s19 = sld [smem:[#allocation2 + $0xf]]  ;;  %s218_s20 = smov [#allocation7]  }
  0x28   :  { %v49_v10 = vadd.f32 %v48_v5, %v45_v3  ;;  %v63_v11 = vmul.f32 %v62_v9, %v39_v1  ;;  %v74_v12 = vstv %s131_s10  ;;  %v77_v15 = vstv %s132_s11  ;;  %s113_s21 = sshll.u32 %s218_s20, 4  ;;  %s114_s21 = int_to_ptr.vmem [resolvable:$true] %s113_s21 }
  0x29   :  { %v75_v14 = vmul.f32 %v74_v12, %v37_v0  ;;  %v78_v18 = vmul.f32 %v77_v15, %v39_v1  ;;  %v81_v19 = vstv %s260_s12  ;;  %v89_v20 = vstv %s135_s1  ;;  %s186_s22 = scalar_lea.vmem %s114_s21, 128  ;;  %p191_p12 = scmp.lt.s32.totalorder %s114_s21, %s114_s21 }
  0x2a   :  { %v52_v16 = vadd.f32 %v51_v7, %v49_v10  ;;  %v64_v17 = vadd.f32 %v63_v11, %v60_v8  ;;  %v92_v21 = vstv %s136_s13  ;;  %v90_v24 = vmul.f32 %v89_v20, %v37_v0  ;;  %p187_p11 = scmp.ne.s32.totalorder %s114_s21, %s186_s22  ;;  %p192_p13 = scmp.lt.s32.totalorder %s186_s22, %s186_s22 }
  0x2b   :  { %v79_v23 = vadd.f32 %v78_v18, %v75_v14  ;;  %v93_v25 = vmul.f32 %v92_v21, %v39_v1  ;;  %v96_v27 = vstv %s137_s14  ;;  %v55_v30 = vstv %s126_s15 }
  0x2c   :  { %144 = vtanh.f32 %v52_v16  ;;  %v67_v22 = vadd.f32 %v66_v13, %v64_v17  ;;  %v41_v32 = vstv %s123_s16  ;;  %v70_v33 = vstv %s130_s17  ;;  %p193_p0 = por %p192_p13, %p191_p12 }
  0x2d   :  { %v82_v26 = vadd.f32 %v81_v19, %v79_v23  ;;  %v94_v28 = vadd.f32 %v93_v25, %v90_v24  ;;  %v85_v36 = vstv %s134_s18  ;;  %v100_v42 = vstv %s138_s19 }
  0x2e   :  { %146 = vtanh.f32 %v67_v22  ;;  %p194_p1 = pnand %p193_p0, %p187_p11 }
  0x2f   :  { %148 = vtanh.f32 %v82_v26  ;;  %v97_v29 = vadd.f32 %v96_v27, %v94_v28 }
  0x31   :  { %150 = vtanh.f32 %v97_v29 }
  0x36   :  { %v145_v31 = vpop.eup %144 }
  0x37   :  { %v56_v34 = vmul.f32 %v145_v31, %v55_v30 }
  0x38   :  { %v147_v35 = vpop.eup %146 }
  0x39   :  { %v57_v37 = vadd.f32 %v56_v34, %v41_v32  ;;  %v71_v38 = vmul.f32 %v147_v35, %v70_v33  ;;  %v149_v39 = vpop.eup %148 }
  0x3a   :  { %v86_v41 = vmul.f32 %v149_v39, %v85_v36 }
  0x3b   :  { %v72_v40 = vadd.f32 %v71_v38, %v57_v37  ;;  %v151_v43 = vpop.eup %150 }
  0x3c   :  { %v101_v45 = vmul.f32 %v151_v43, %v100_v42 }
  0x3d   :  { %v87_v44 = vadd.f32 %v86_v41, %v72_v40 }
  0x3f   :  { %v102_v46 = vadd.f32 %v101_v45, %v87_v44 }
  0x41   :  { %152 = vtanh.f32 %v102_v46 }
  0x4b   :  { %v153_v47 = vpop.eup %152 }
  0x4c   :  { %v104_v48 = vmul.f32 0.5, %v153_v47 }
  0x4e   :  { %v105_v49 = vadd.f32 0.5, %v104_v48 }
  0x50   :  { %106 = vst [vmem:[#allocation7] sm:$0xff] %v105_v49 }
  0x51   :  { %197 = shalt.err (!%p194_p1)
}
  0x52   :  { %s198_s25 = scalar_lea.hbm %s278_s2, 128 }
  0x53   :  { %p199_p2 = scmp.ne.s32.totalorder %s278_s2, %s198_s25  ;;  %p202_p3 = scmp.lt.u32.totalorder %s198_s25, %s278_s2 }
  0x55   :  { %p204_p4 = pnand %p202_p3, %p199_p2 }
  0x57   :  { %207 = shalt.err (!%p204_p4)
}
  0x58   :  { %116 = dma.vmem_to_hbm [thread:$0]  %s114_s21, 128, %s278_s2, [#allocation4]  }
  0x59   :  { %212 = dma.done.wait [#allocation4], 128  }
  0x5a   :  { %213 = vsyncadd [#allocation4], 4294967168 }
  0x5b   :  { %120 = vsyncpa [#allocation3], 1 }
  0x5c   :  { %121 = vsyncpa [#allocation4], 1 }
  0x5d   :  { %122 = vsyncpa [#allocation5], 1 }

</bundles_post_ra>
